<compile_context>
chip_gen: v6e
topology: v6e:2x2x1
jax: 0.10.0
libtpu: 0.0.40
codegen_flags: <defaults>
</compile_context>

<pallas_src>
import jax
import jax.numpy as jnp
from jax.experimental import pallas as pl
from jax.experimental.pallas import tpu as pltpu


def _round_up(x, m):
    return ((x + m - 1) // m) * m


def _block_bytes(shape, dtype):
    n = 1
    for s in shape:
        n *= int(s)
    return n * jnp.dtype(dtype).itemsize


def _vmem_limit(blocks, extra_bytes=0):
    # Inputs/outputs are double-buffered by the Pallas pipeline by default.
    need = 2 * sum(_block_bytes(s, d) for s, d in blocks) + int(extra_bytes)
    return int(min(max(2 * need, 32 << 20), 100 << 20))


# -----------------------------------------------------------------------------
# Kernel 1: node projection into the packed layout.
#   (tile_n, Dn_in) @ (Dn_in, D_p) + (1, D_p)  ->  bf16 (tile_n, D_p)
# Only columns [0:Dn] of the padded weight/bias are nonzero.
# -----------------------------------------------------------------------------
def _node_proj_kernel(x_ref, w_ref, b_ref, o_ref):
    acc = jnp.dot(x_ref[...].astype(jnp.bfloat16), w_ref[...],
                  preferred_element_type=jnp.float32)
    o_ref[...] = (acc + b_ref[...]).astype(o_ref.dtype)


# -----------------------------------------------------------------------------
# Kernel 2: edge projection + copy_u gather (one-hot MXU matmul) + packed write.
#   gathered = onehot(src) @ node_proj          -> columns [0:Dn]
#   eproj    = edge_feats  @ We_padded + be     -> columns [Dn:Dn+De]
#   out      = gathered + eproj                 (disjoint column support)
# -----------------------------------------------------------------------------
def _edge_init_kernel(src_ref,       # VMEM (tile_e, 1) int32, per-tile block
                      nproj_ref,     # VMEM (n_pad, D_p) bf16, resident
                      edge_ref,      # VMEM (tile_e, De_in) f32
                      w_ref,         # VMEM (De_in, D_p) bf16, resident
                      b_ref,         # VMEM (1, D_p) f32, resident
                      out_ref):      # VMEM (tile_e, D_p) f32
    tile_e = edge_ref.shape[0]
    n_pad = nproj_ref.shape[0]

    idx = src_ref[...]                                               # (tile_e, 1)
    iota = jax.lax.broadcasted_iota(jnp.int32, (tile_e, n_pad), 1)   # (tile_e, n_pad)
    onehot = jnp.where(iota == idx,
                       jnp.ones((), jnp.bfloat16),
                       jnp.zeros((), jnp.bfloat16))

    gathered = jnp.dot(onehot, nproj_ref[...],
                       preferred_element_type=jnp.float32)           # (tile_e, D_p)
    eproj = jnp.dot(edge_ref[...].astype(jnp.bfloat16), w_ref[...],
                    preferred_element_type=jnp.float32)              # (tile_e, D_p)

    # Single unmasked, lane-dense store of the fused/concatenated row.
    out_ref[...] = (gathered + eproj + b_ref[...]).astype(out_ref.dtype)


# -----------------------------------------------------------------------------
# One-time parameter prep (outside the hot path):
#   * transpose PyTorch (out, in) weights to (in, out),
#   * pad both projections into a single packed output width
#     D_p = round_up(Dn + De, 128)  (node cols [0:Dn], edge cols [Dn:Dn+De]),
#   * pre-cast weights to bf16 (MXU-native); biases stay f32 (post-acc add).
# -----------------------------------------------------------------------------
def prepare_params(wn, bn, we, be):
    dn, dn_in = wn.shape
    de, de_in = we.shape
    d_out = dn + de
    d_p = _round_up(d_out, 128)

    wn_cat = (jnp.zeros((dn_in, d_p), jnp.float32)
              .at[:, :dn].set(wn.T).astype(jnp.bfloat16))
    bn_cat = jnp.zeros((1, d_p), jnp.float32).at[:, :dn].set(bn.reshape(1, dn))
    we_cat = (jnp.zeros((de_in, d_p), jnp.float32)
              .at[:, dn:dn + de].set(we.T).astype(jnp.bfloat16))
    be_cat = jnp.zeros((1, d_p), jnp.float32).at[:, dn:dn + de].set(be.reshape(1, de))

    return dict(wn_cat=wn_cat, bn_cat=bn_cat, we_cat=we_cat, be_cat=be_cat,
                dn=dn, de=de, d_out=d_out, d_p=d_p)


def input_initializer(node_feats, edge_feats, src, params,
                      *, tile_e=1024, tile_n=512):
    wn_cat, bn_cat = params["wn_cat"], params["bn_cat"]
    we_cat, be_cat = params["we_cat"], params["be_cat"]
    d_out, d_p = params["d_out"], params["d_p"]

    n, dn_in = node_feats.shape
    e, de_in = edge_feats.shape

    # --- node tiling -------------------------------------------------------
    tile_n = min(tile_n, _round_up(n, 8))
    n_pad = _round_up(n, tile_n)
    if n_pad != n:
        node_feats = jnp.zeros((n_pad, dn_in), node_feats.dtype).at[:n].set(node_feats)

    # --- edge tiling (keep the in-register one-hot under ~4 MiB) ------------
    tile_e = min(tile_e, _round_up(e, 8))
    onehot_cap_rows = max(8, (((4 << 20) // max(2 * n_pad, 1)) // 8) * 8)
    tile_e = min(tile_e, onehot_cap_rows)
    e_pad = _round_up(e, tile_e)

    src2 = src.astype(jnp.int32).reshape(-1, 1)
    if e_pad != e:
        edge_feats = jnp.zeros((e_pad, de_in), edge_feats.dtype).at[:e].set(edge_feats)
        src2 = jnp.zeros((e_pad, 1), jnp.int32).at[:e].set(src2)

    # --- kernel 1: node projection (bf16 output, stays small in HBM/VMEM) ---
    node_vmem = _vmem_limit([((tile_n, dn_in), jnp.float32),
                             ((dn_in, d_p), jnp.bfloat16),
                             ((1, d_p), jnp.float32),
                             ((tile_n, d_p), jnp.bfloat16)])
    node_proj = pl.pallas_call(
        _node_proj_kernel,
        out_shape=jax.ShapeDtypeStruct((n_pad, d_p), jnp.bfloat16),
        grid_spec=pltpu.PrefetchScalarGridSpec(
            num_scalar_prefetch=0,
            grid=(n_pad // tile_n,),
            in_specs=[pl.BlockSpec((tile_n, dn_in), lambda i: (i, 0)),
                      pl.BlockSpec((dn_in, d_p), lambda i: (0, 0)),
                      pl.BlockSpec((1, d_p), lambda i: (0, 0))],
            out_specs=pl.BlockSpec((tile_n, d_p), lambda i: (i, 0)),
        ),
        compiler_params=pltpu.CompilerParams(
            dimension_semantics=("parallel",),
            vmem_limit_bytes=node_vmem),
    )(node_feats, wn_cat, bn_cat)

    # --- kernel 2: edge projection + gather + packed concat -----------------
    edge_vmem = _vmem_limit(
        [((tile_e, 1), jnp.int32),
         ((n_pad, d_p), jnp.bfloat16),
         ((tile_e, de_in), jnp.float32),
         ((de_in, d_p), jnp.bfloat16),
         ((1, d_p), jnp.float32),
         ((tile_e, d_p), jnp.float32)],
        extra_bytes=_block_bytes((tile_e, n_pad), jnp.bfloat16)
                    + 2 * _block_bytes((tile_e, d_p), jnp.float32))

    out = pl.pallas_call(
        _edge_init_kernel,
        out_shape=jax.ShapeDtypeStruct((e_pad, d_p), jnp.float32),
        grid_spec=pltpu.PrefetchScalarGridSpec(
            num_scalar_prefetch=0,
            grid=(e_pad // tile_e,),
            in_specs=[pl.BlockSpec((tile_e, 1), lambda i: (i, 0)),      # src idx
                      pl.BlockSpec((n_pad, d_p), lambda i: (0, 0)),     # node_proj
                      pl.BlockSpec((tile_e, de_in), lambda i: (i, 0)),  # edge feats
                      pl.BlockSpec((de_in, d_p), lambda i: (0, 0)),     # We (bf16)
                      pl.BlockSpec((1, d_p), lambda i: (0, 0))],        # be
            out_specs=pl.BlockSpec((tile_e, d_p), lambda i: (i, 0)),
        ),
        compiler_params=pltpu.CompilerParams(
            dimension_semantics=("parallel",),
            vmem_limit_bytes=edge_vmem),
    )(src2, node_proj, edge_feats, we_cat, be_cat)

    # Strip row / tail-lane padding (single cheap slice; no concat pass).
    if e_pad == e and d_p == d_out:
        return out
    return out[:e, :d_out]


if __name__ == "__main__":
    # Small synthetic graph: N nodes, E directed edges with source indices.
    N, E = 8, 16
    IN_NODE_FEATS, IN_EDGE_FEATS = 32, 32

    key = jax.random.PRNGKey(0)
    k_node, k_edge, k_src, k_wn, k_bn, k_we, k_be = jax.random.split(key, 7)

    node_feats = jax.random.normal(k_node, (N, IN_NODE_FEATS), jnp.float32)
    edge_feats = jax.random.normal(k_edge, (E, IN_EDGE_FEATS), jnp.float32)
    src = jax.random.randint(k_src, (E,), 0, N, jnp.int32)   # edge source nodes

    # PyTorch Linear shapes: weight (out, in), bias (out,).
    wn = jax.random.normal(k_wn, (IN_NODE_FEATS, IN_NODE_FEATS), jnp.float32) * 0.1
    bn = jax.random.normal(k_bn, (IN_NODE_FEATS,), jnp.float32) * 0.1
    we = jax.random.normal(k_we, (IN_EDGE_FEATS, IN_EDGE_FEATS), jnp.float32) * 0.1
    be = jax.random.normal(k_be, (IN_EDGE_FEATS,), jnp.float32) * 0.1

    params = prepare_params(wn, bn, we, be)   # one-time transpose/pad/bf16-cast
    out = input_initializer(node_feats, edge_feats, src, params)
    out = jax.block_until_ready(out)

    # Reference (a): mirrors the kernel's math (bf16 MXU inputs, bf16-stored
    # node projection, f32 edge projection accumulation).
    def bf16(x):
        return x.astype(jnp.bfloat16).astype(jnp.float32)
    nproj_ref = (bf16(node_feats) @ bf16(wn).T + bn).astype(jnp.bfloat16).astype(jnp.float32)
    eproj_ref = bf16(edge_feats) @ bf16(we).T + be
    ref_kernel_math = jnp.concatenate([nproj_ref[src], eproj_ref], axis=1)

    # Reference (b): pure f32 PyTorch semantics (looser tolerance: bf16 MXU path).
    ref_f32 = jnp.concatenate([(node_feats @ wn.T + bn)[src],
                               edge_feats @ we.T + be], axis=1)

    assert out.shape == (E, IN_NODE_FEATS + IN_EDGE_FEATS)
    assert jnp.allclose(out, ref_kernel_math, atol=1e-2, rtol=1e-2), "mismatch vs kernel-math ref"
    assert jnp.allclose(out, ref_f32, atol=5e-2, rtol=5e-2), "mismatch vs f32 ref"
    print("KERNEL_OK")
</pallas_src>

<mosaic_0001>
module attributes {stable_mosaic.version = 11 : i64} {
  func.func @_node_proj_kernel(%arg0: i32, %arg1: memref<8x32xf32, #tpu.memory_space<vmem>>, %arg2: memref<32x128xbf16, #tpu.memory_space<vmem>>, %arg3: memref<1x128xf32, #tpu.memory_space<vmem>>, %arg4: memref<8x128xbf16, #tpu.memory_space<vmem>>) attributes {dimension_semantics = [#tpu.dimension_semantics<parallel>], iteration_bounds = array<i64: 1>, scalar_prefetch = 0 : i64, scratch_operands = 0 : i64, tpu.core_type = #tpu.core_type<tc>, window_params = [{transform_indices = @transform_0, window_bounds = array<i64: 8, 32>}, {pipeline_mode = #tpu.pipeline_mode<synchronous>, transform_indices = @transform_1, window_bounds = array<i64: 32, 128>}, {pipeline_mode = #tpu.pipeline_mode<synchronous>, transform_indices = @transform_2, window_bounds = array<i64: 1, 128>}, {transform_indices = @transform_3, window_bounds = array<i64: 8, 128>}]} {
    %c0 = arith.constant 0 : index
    %c0_0 = arith.constant 0 : index
    %0 = vector.load %arg1[%c0, %c0_0] : memref<8x32xf32, #tpu.memory_space<vmem>>, vector<8x32xf32>
    %1 = arith.truncf %0 : vector<8x32xf32> to vector<8x32xbf16>
    %c0_1 = arith.constant 0 : index
    %c0_2 = arith.constant 0 : index
    %2 = vector.load %arg2[%c0_1, %c0_2] : memref<32x128xbf16, #tpu.memory_space<vmem>>, vector<32x128xbf16>
    %cst = arith.constant dense<0.000000e+00> : vector<8x128xf32>
    %3 = tpu.matmul %1, %2, %cst {dimension_numbers = #tpu.dot_dimension_numbers<[1], [0], [0], [1], [0, 0, 1, 1], [], []>} : vector<8x32xbf16>, vector<32x128xbf16>, vector<8x128xf32> -> vector<8x128xf32>
    %c0_3 = arith.constant 0 : index
    %c0_4 = arith.constant 0 : index
    %4 = vector.load %arg3[%c0_3, %c0_4] : memref<1x128xf32, #tpu.memory_space<vmem>>, vector<1x128xf32>
    %5 = vector.broadcast %4 : vector<1x128xf32> to vector<8x128xf32>
    %6 = arith.addf %3, %5 : vector<8x128xf32>
    %7 = arith.truncf %6 : vector<8x128xf32> to vector<8x128xbf16>
    %c0_5 = arith.constant 0 : index
    %c0_6 = arith.constant 0 : index
    %8 = vector.load %arg4[%c0_5, %c0_6] : memref<8x128xbf16, #tpu.memory_space<vmem>>, vector<8x128xbf16>
    tpu.vector_store %arg4[%c0_5, %c0_6], %7 {strides = array<i32>} : memref<8x128xbf16, #tpu.memory_space<vmem>>, vector<8x128xbf16>,
    return
  }
  func.func @transform_0(%arg0: i32) -> (i32, i32) {
    %c0_i32 = arith.constant 0 : i32
    %c0_i32_0 = arith.constant 0 : i32
    return %arg0, %c0_i32 : i32, i32
  }
  func.func @transform_1(%arg0: i32) -> (i32, i32) {
    %c0_i32 = arith.constant 0 : i32
    %c0_i32_0 = arith.constant 0 : i32
    %c0_i32_1 = arith.constant 0 : i32
    return %c0_i32, %c0_i32_0 : i32, i32
  }
  func.func @transform_2(%arg0: i32) -> (i32, i32) {
    %c0_i32 = arith.constant 0 : i32
    %c0_i32_0 = arith.constant 0 : i32
    %c0_i32_1 = arith.constant 0 : i32
    return %c0_i32, %c0_i32_0 : i32, i32
  }
  func.func @transform_3(%arg0: i32) -> (i32, i32) {
    %c0_i32 = arith.constant 0 : i32
    %c0_i32_0 = arith.constant 0 : i32
    return %arg0, %c0_i32 : i32, i32
  }
}

</mosaic_0001>

<bundles_post_ra>
// kernel: tpu_custom_call.1
= control target key start
LH: loop header
LB: loop body
LE: loop exit
PB: predicated region body
PF: predicated region fallthrough
CT: control target
= control target key end

     0   :  { %8 = vsyncpa [#allocation3], 0  ;;  %s258_s0 = inlined_call_operand.hbm [shape: f32[8,32], index: 0, kind: input, shape index: {}]   ;;  %s259_s1 = inlined_call_operand.hbm [shape: bf16[32,128], index: 1, kind: input, shape index: {}]   ;;  %s260_s2 = inlined_call_operand.vmem [shape: f32[1,128], index: 2, kind: input, shape index: {}]   ;;  %s261_s3 = inlined_call_operand.hbm [shape: bf16[8,128], index: 3, kind: output, shape index: {}]  }
   0x1   :  { %9 = vsyncpa [#allocation6], 0 }
   0x2   :  { %10 = vsyncpa [#allocation4], 0  ;;  %s219_s12 = smov [#allocation2]   ;;  %s220_s14 = smov [#allocation5]  }
   0x3   :  { %s17_s13 = sshll.u32 %s219_s12, 4  ;;  %s26_s15 = sshll.u32 %s220_s14, 4  ;;  %s18_s13 = int_to_ptr.vmem [resolvable:$true] %s17_s13  ;;  %s27_s15 = int_to_ptr.vmem [resolvable:$true] %s26_s15 }
   0x4   :  { %s161_s16 = scalar_lea.vmem %s18_s13, 128  ;;  %p166_p1 = scmp.lt.s32.totalorder %s18_s13, %s18_s13 }
   0x5   :  { %p162_p0 = scmp.ne.s32.totalorder %s18_s13, %s161_s16  ;;  %p167_p2 = scmp.lt.s32.totalorder %s161_s16, %s161_s16 }
   0x7   :  { %p168_p3 = por %p167_p2, %p166_p1 }
   0x9   :  { %p169_p4 = pnand %p168_p3, %p162_p0 }
   0xb   :  { %172 = shalt.err (!%p169_p4)
}
   0xc   :  { %20 = dma.hbm_to_vmem [thread:$0]  %s258_s0, 128, %s18_s13, [#allocation3]  }
   0xd   :  { %s181_s19 = scalar_lea.vmem %s27_s15, 256  ;;  %p186_p6 = scmp.lt.s32.totalorder %s27_s15, %s27_s15 }
   0xe   :  { %p182_p5 = scmp.ne.s32.totalorder %s27_s15, %s181_s19  ;;  %p187_p7 = scmp.lt.s32.totalorder %s181_s19, %s181_s19 }
  0x10   :  { %p188_p8 = por %p187_p7, %p186_p6 }
  0x12   :  { %p189_p9 = pnand %p188_p8, %p182_p5 }
  0x14   :  { %192 = shalt.err (!%p189_p9)
}
  0x15   :  { %s221_s20 = smov 64   ;;  %s222_s21 = smov 4  }
  0x16   :  { %32 = dma.hbm_to_vmem [thread:$0]  %s259_s1, 256, %s27_s15, [#allocation6], %s221_s20, %s221_s20, %s222_s21  }
  0x17   :  { %213 = dma.done.wait [#allocation3], 128  }
  0x18   :  { %214 = vsyncadd [#allocation3], 4294967168 }
  0x19   :  { %215 = dma.done.wait [#allocation6], 256  }
  0x1a   :  { %216 = vsyncadd [#allocation6], 4294967040  ;;  %v223_v0 = vmov 0.0   ;;  %vm224_vm0 = vmmov 0   ;;  %v151_v1 = vld [vmem:[#allocation5 + $0x8] sm:$0xff]   ;;  %v152_v2 = vld [vmem:[#allocation5] sm:$0xff]  }
  0x1b   :  { %136 = vmatprep.subr.bf16.mxu0 %v223_v0  ;;  %140 = vmatprep.mubr.msk.bf16.mxu0 %vm224_vm0, %v223_v0  ;;  %v42_v3 = vld [vmem:[#allocation2] sm:$0xff]  ;;  %vm67_vm1 = vcmask 261120   ;;  %s225_s1 = smov [#allocation7]  }
  0x1c   :  { %137 = vmatpush3.bf16.msra.mxu0 %v151_v1  ;;  %v43_v4 = vpack.c.bf16 %v42_v3, %v42_v3  ;;  %v129_v5 = vld [vmem:[%s260_s2] ss:$0 sm:$0xff]  ;;  %s119_s25 = sshll.u32 %s225_s1, 4  ;;  %s120_s25 = int_to_ptr.vmem [resolvable:$true] %s119_s25 }
  0x1d   :  { %138 = vmatprep.subr.bf16.mxu0 %v223_v0  ;;  %s193_s26 = scalar_lea.vmem %s120_s25, 64  ;;  %p198_p11 = scmp.lt.s32.totalorder %s120_s25, %s120_s25 }
  0x1e   :  { %p194_p10 = scmp.ne.s32.totalorder %s120_s25, %s193_s26  ;;  %p199_p12 = scmp.lt.s32.totalorder %s193_s26, %s193_s26 }
  0x20   :  { %139 = vmatpush3.bf16.msra.mxu0 %v152_v2  ;;  %p200_p13 = por %p199_p12, %p198_p11 }
  0x22   :  { %p201_p0 = pnand %p200_p13, %p194_p10 }
  0x23   :  { %141 = vmatmul.mubr.msk.bf16.vlgmr.msra.gmra.mxu0 %vm67_vm1, %v43_v4 }
  0xe3   :  { %v105_v6 = vpop.f32.mrf.mxu0 }
  0xe4   :  { %v106_v7 = vadd.f32 %v129_v5, %v105_v6 }
  0xe5   :  { %v142_v8 = vpop.f32.mrf.mxu0 }
  0xe6   :  { %v111_v9 = vpack.c.bf16 %v106_v7, %v106_v7 }
  0xe7   :  { %v108_v10 = vpop.f32.mrf.mxu0 }
  0xe8   :  { %112 = vst [vmem:[#allocation7] sm:$0xf] %v111_v9 }
  0xe9   :  { %v143_v11 = vpop.f32.mrf.mxu0 }
  0xea   :  { %204 = shalt.err (!%p201_p0)
}
  0xeb   :  { %122 = dma.vmem_to_hbm [thread:$0]  %s120_s25, 64, %s261_s3, [#allocation4]  }
  0xec   :  { %217 = dma.done.wait [#allocation4], 64  }
  0xed   :  { %218 = vsyncadd [#allocation4], 4294967232 }
  0xee   :  { %126 = vsyncpa [#allocation3], 1 }
  0xef   :  { %127 = vsyncpa [#allocation6], 1 }
  0xf0   :  { %128 = vsyncpa [#allocation4], 1 }

</bundles_post_ra>
